<compile_context>
chip_gen: v6e
topology: v6e:2x2x1
jax: 0.10.0
libtpu: 0.0.40
codegen_flags: <defaults>
</compile_context>

<pallas_src>
import numpy as np
import jax
import jax.numpy as jnp
from jax import lax
from jax.experimental import pallas as pl
from jax.experimental.pallas import tpu as pltpu

# ----------------------- config (CrowdDet-style constants) -----------------
NUM_CLASSES = 2
IMAGE_MEAN = (103.530, 116.280, 123.675)
IMAGE_STD = (57.375, 57.120, 58.395)
BBOX_STDS = (0.1, 0.1, 0.2, 0.2)
BBOX_MEANS = (0.0, 0.0, 0.0, 0.0)

# ----------------------- small synthetic shapes -----------------------------
N_ROIS = 8       # stands in for 512 rois
CH = 32          # stands in for 256 FPN channels
POOL = 7         # ROIAlign output size (kept at 7, as in the module)
FC_DIM = 128     # stands in for 1024 hidden units
FLAT = CH * POOL * POOL

HEAD_PAD = 128   # lane-dense width for the packed prediction heads / output
# Scoped VMEM budget for the fused head.  32 MiB is safe on every generation;
# raise toward ~100 MiB on 128-MiB v5e/v6e when running production-size tiles.
VMEM_LIMIT = 32 * 1024 * 1024


# ============================================================================
# Kernel 1: image normalization fused with pad-to-multiple-of-64
#           (mean / reciprocal-std baked as scalar constants)
# ============================================================================
def _img_norm_pad_kernel(img_ref, o_ref):
    C = img_ref.shape[1]
    H = img_ref.shape[2]
    W = img_ref.shape[3]
    o_ref[...] = jnp.zeros_like(o_ref)          # zero the 64-aligned border
    for c in range(C):                          # constants baked, mul by 1/std
        o_ref[:, c:c + 1, 0:H, 0:W] = (
            (img_ref[:, c:c + 1, :, :] - IMAGE_MEAN[c]) * (1.0 / IMAGE_STD[c]))


def image_normalize_pad(image, multiple=64):
    B, C, H, W = image.shape
    Hp = -(-H // multiple) * multiple
    Wp = -(-W // multiple) * multiple
    # TODO(synk): at real ~800x1344 image sizes, additionally tile the grid
    # over H (e.g. (1, C, 128, Wp) blocks) to stay VMEM-friendly on v7x.
    return pl.pallas_call(
        _img_norm_pad_kernel,
        out_shape=jax.ShapeDtypeStruct((B, C, Hp, Wp), jnp.float32),
        grid=(B,),
        in_specs=[pl.BlockSpec((1, C, H, W), lambda b: (b, 0, 0, 0))],
        out_specs=pl.BlockSpec((1, C, Hp, Wp), lambda b: (b, 0, 0, 0)),
        compiler_params=pltpu.CompilerParams(dimension_semantics=("parallel",)),
    )(image)


# ============================================================================
# Kernel 2: fully fused RCNN head
# ============================================================================
def _fused_rcnn_kernel(
    xpad_ref, rois_ref,
    wconv_ref, bconv_ref,
    w1_ref, b1_ref, w2_ref, b2_ref,
    wemd_ref, bemd_ref,
    w3f_ref, w3b_ref, b3_ref,
    wref0_ref, bref0_ref, wref1_ref, bref1_ref,
    out_ref,
):
    f32 = jnp.float32
    bf16 = jnp.bfloat16
    HP, WP, TN, C = xpad_ref.shape
    H, W = HP - 2, WP - 2
    COUT = wconv_ref.shape[2]
    D = w1_ref.shape[1]

    # ---- (set_refine_convA + set_refine_convB)/2 as 9 accumulating MXU taps.
    # Rows of `conv` are ordered (h, w, n); im2col never touches HBM.
    acc = jnp.zeros((H * W * TN, COUT), f32)
    for kh in range(3):
        for kw in range(3):
            xs = xpad_ref[kh:kh + H, kw:kw + W, :, :]        # (H, W, TN, C)
            lhs = xs.reshape(H * W * TN, C).astype(bf16)     # aligned merge
            acc = acc + jnp.dot(lhs, wconv_ref[kh * 3 + kw],
                                preferred_element_type=f32)
    conv = (acc + bconv_ref[...]) * 0.5                      # f32

    # ---- fc1: torch.flatten folded into the (h,w,c)-permuted fc1 weight.
    # The contraction is a sum of 49 (TN, COUT) @ (COUT, D) blocks, so the
    # conv output feeds fc1 directly -- no transpose, no HBM round trip.
    h1 = jnp.zeros((TN, D), f32)
    for j in range(H * W):
        cj = conv[j * TN:(j + 1) * TN, :].astype(bf16)
        h1 = h1 + jnp.dot(cj, w1_ref[j * COUT:(j + 1) * COUT, :],
                          preferred_element_type=f32)
    h1 = jnp.maximum(h1 + b1_ref[...], 0.0)                  # fc1 + relu

    # ---- fc2 + relu ----
    h2 = jnp.maximum(
        jnp.dot(h1.astype(bf16), w2_ref[...], preferred_element_type=f32)
        + b2_ref[...], 0.0)
    h2b = h2.astype(bf16)

    def softmax(z):                                          # f32, EUP recip
        m = jnp.max(z, axis=-1, keepdims=True)
        e = jnp.exp(z - m)
        return e * pl.reciprocal(jnp.sum(e, axis=-1, keepdims=True),
                                 approx=True)

    # ---- packed emd heads: [cls0(2) | cls1(2) | dlt0(8) | dlt1(8) | 0-pad] --
    emd = (jnp.dot(h2b, wemd_ref[...], preferred_element_type=f32)
           + bemd_ref[...])
    sc0 = softmax(emd[:, 0:2])
    sc1 = softmax(emd[:, 2:4])
    dlt0 = emd[:, 4:12]
    dlt1 = emd[:, 12:20]

    # boxes_feature = cat(delta[:, 4:], score[:, 1:2]) -> (TN, 5); the
    # .repeat(1, 4) is folded into w3b (its 4 row-blocks were pre-summed).
    box0 = jnp.concatenate([dlt0[:, 4:8], sc0[:, 1:2]], axis=1)
    box1 = jnp.concatenate([dlt1[:, 4:8], sc1[:, 1:2]], axis=1)

    # ---- fc3: shared h2 @ w3f hoisted and computed once ----
    z_shared = (jnp.dot(h2b, w3f_ref[...], preferred_element_type=f32)
                + b3_ref[...])
    r0 = jnp.maximum(
        z_shared + jnp.dot(box0, w3b_ref[...], preferred_element_type=f32), 0.0)
    r1 = jnp.maximum(
        z_shared + jnp.dot(box1, w3b_ref[...], preferred_element_type=f32), 0.0)

    # ---- packed refinement heads: [cls(2) | dlt(8) | 0-pad] ----
    e0 = (jnp.dot(r0.astype(bf16), wref0_ref[...], preferred_element_type=f32)
          + bref0_ref[...])
    e1 = (jnp.dot(r1.astype(bf16), wref1_ref[...], preferred_element_type=f32)
          + bref1_ref[...])
    s0 = softmax(e0[:, 0:2])[:, 1:2]
    s1 = softmax(e1[:, 0:2])[:, 1:2]
    d0 = e0[:, 6:10]
    d1 = e1[:, 6:10]

    # ---- bbox decode (restore_bbox) ----
    rois = rois_ref[...]                                     # (TN,4) x1,y1,x2,y2
    bw = rois[:, 2:3] - rois[:, 0:1] + 1.0
    bh = rois[:, 3:4] - rois[:, 1:2] + 1.0
    cx = rois[:, 0:1] + 0.5 * bw
    cy = rois[:, 1:2] + 0.5 * bh

    def restore(d):
        dx = d[:, 0:1] * BBOX_STDS[0] + BBOX_MEANS[0]
        dy = d[:, 1:2] * BBOX_STDS[1] + BBOX_MEANS[1]
        dw = d[:, 2:3] * BBOX_STDS[2] + BBOX_MEANS[2]
        dh = d[:, 3:4] * BBOX_STDS[3] + BBOX_MEANS[3]
        pcx = cx + dx * bw
        pcy = cy + dy * bh
        pw = bw * jnp.exp(dw)
        ph = bh * jnp.exp(dh)
        return jnp.concatenate(
            [pcx - 0.5 * pw, pcy - 0.5 * ph, pcx + 0.5 * pw, pcy + 0.5 * ph],
            axis=1)

    tag = jnp.ones_like(s0)                                  # class_num == 1
    pad = jnp.zeros((TN, out_ref.shape[1] - 12), f32)
    # 128-lane-dense store; the (N, 12) view is sliced outside the kernel.
    out_ref[...] = jnp.concatenate(
        [restore(d0), s0, tag, restore(d1), s1, tag, pad], axis=1)


def rcnn_forward(pooled_nchw, rcnn_rois, w):
    N, C, H, W = pooled_nchw.shape
    # Layout glue only: the roi_pooler stand-in hands us NCHW; a production
    # Pallas roi_pooler would emit this (H, W, N, C) layout directly so the
    # fused kernel never needs a transpose anywhere.
    xhwnc = jnp.transpose(pooled_nchw, (2, 3, 0, 1))
    xpad = jnp.pad(xhwnc, ((1, 1), (1, 1), (0, 0), (0, 0)))  # 1-px halo only
    rois = rcnn_rois[:, 1:5]

    TN = N if N <= 128 else 128                  # roi-row tile (parallel axis)
    assert N % TN == 0, "roi count must be a multiple of the row tile"
    # TODO(synk): at production scale (N=512, FLAT=12544) additionally tile the
    # fc1 reduction (K) with a VMEM f32 accumulator + pl.when init/finalize so
    # the bf16 fc1 weight block stays within v7x's 64 MiB VMEM.

    def full(a):
        return pl.BlockSpec(a.shape, lambda i, nd=a.ndim: (0,) * nd)

    out = pl.pallas_call(
        _fused_rcnn_kernel,
        out_shape=jax.ShapeDtypeStruct((N, HEAD_PAD), jnp.float32),
        grid=(N // TN,),
        in_specs=[
            pl.BlockSpec((H + 2, W + 2, TN, C), lambda i: (0, 0, i, 0)),
            pl.BlockSpec((TN, 4), lambda i: (i, 0)),
            full(w['wconv']), full(w['bconv']),
            full(w['w1']), full(w['b1']),
            full(w['w2']), full(w['b2']),
            full(w['wemd']), full(w['bemd']),
            full(w['w3f']), full(w['w3b']), full(w['b3']),
            full(w['wref0']), full(w['bref0']),
            full(w['wref1']), full(w['bref1']),
        ],
        out_specs=pl.BlockSpec((TN, HEAD_PAD), lambda i: (i, 0)),
        compiler_params=pltpu.CompilerParams(
            dimension_semantics=("parallel",),
            vmem_limit_bytes=VMEM_LIMIT,
        ),
    )(xpad, rois,
      w['wconv'], w['bconv'], w['w1'], w['b1'], w['w2'], w['b2'],
      w['wemd'], w['bemd'], w['w3f'], w['w3b'], w['b3'],
      w['wref0'], w['bref0'], w['wref1'], w['bref1'])
    return out[:, :12]


# ============================================================================
# One-time parameter preparation (host side)
# ============================================================================
def prep_params(p):
    f32, bf16 = jnp.float32, jnp.bfloat16
    cout, cin = p['convA_w'].shape[0], p['convA_w'].shape[1]
    D = p['fc1_w'].shape[0]

    def conv_eff(wc):   # (Cout, Cin, 3, 3) -> (9, Cin, Cout), (kh, kw) major
        return jnp.transpose(wc, (2, 3, 1, 0)).reshape(9, cin, cout)

    wconv = (conv_eff(p['convA_w']) + conv_eff(p['convB_w'])).astype(bf16)
    bconv = (p['convA_b'] + p['convB_b']).reshape(1, cout).astype(f32)

    # fc1 input-column permutation (c, h, w) -> (h, w, c): removes the
    # NHWC->NCHW transpose + flatten that previously sat between conv and fc1.
    w1 = (p['fc1_w'].reshape(D, cout, POOL, POOL)
          .transpose(0, 2, 3, 1).reshape(D, -1).T).astype(bf16)
    b1 = p['fc1_b'].reshape(1, D).astype(f32)
    w2 = p['fc2_w'].T.astype(bf16)
    b2 = p['fc2_b'].reshape(1, D).astype(f32)

    w3t = p['fc3_w'].T                                       # (D + 20, D)
    w3f = w3t[:D].astype(bf16)
    w3b = w3t[D:].reshape(4, 5, D).sum(axis=0).astype(f32)   # fold .repeat(1,4)
    b3 = p['fc3_b'].reshape(1, D).astype(f32)

    def pack(names):     # lane-dense packed heads, zero-padded to 128 cols
        ws = jnp.concatenate([p[n + '_w'].T for n in names], axis=1)
        bs = jnp.concatenate([p[n + '_b'] for n in names]).reshape(1, -1)
        ws = jnp.pad(ws, ((0, 0), (0, HEAD_PAD - ws.shape[1]))).astype(bf16)
        bs = jnp.pad(bs, ((0, 0), (0, HEAD_PAD - bs.shape[1]))).astype(f32)
        return ws, bs

    wemd, bemd = pack(['emd_cls0', 'emd_cls1', 'emd_dlt0', 'emd_dlt1'])
    wref0, bref0 = pack(['ref_cls0', 'ref_dlt0'])
    wref1, bref1 = pack(['ref_cls1', 'ref_dlt1'])
    return dict(wconv=wconv, bconv=bconv, w1=w1, b1=b1, w2=w2, b2=b2,
                wemd=wemd, bemd=bemd, w3f=w3f, w3b=w3b, b3=b3,
                wref0=wref0, bref0=bref0, wref1=wref1, bref1=bref1)


# ============================================================================
# Parameters (deterministic, synthetic)
# ============================================================================
def init_params(key):
    ks = jax.random.split(key, 16)

    def nrm(k, shape, std):
        return (std * jax.random.normal(k, shape, jnp.float32)).astype(jnp.float32)

    p = {}
    p['convA_w'] = nrm(ks[0], (CH, CH, 3, 3), 0.02)
    p['convA_b'] = jnp.zeros((CH,), jnp.float32)
    p['convB_w'] = nrm(ks[1], (CH, CH, 3, 3), 0.02)
    p['convB_b'] = jnp.zeros((CH,), jnp.float32)
    p['fc1_w'] = nrm(ks[2], (FC_DIM, FLAT), 0.02)
    p['fc1_b'] = jnp.zeros((FC_DIM,), jnp.float32)
    p['fc2_w'] = nrm(ks[3], (FC_DIM, FC_DIM), 0.02)
    p['fc2_b'] = jnp.zeros((FC_DIM,), jnp.float32)
    p['fc3_w'] = nrm(ks[4], (FC_DIM, FC_DIM + 20), 0.02)
    p['fc3_b'] = jnp.zeros((FC_DIM,), jnp.float32)
    for i, name in enumerate(['emd_cls0', 'emd_cls1', 'ref_cls0', 'ref_cls1']):
        p[name + '_w'] = nrm(ks[5 + i], (NUM_CLASSES, FC_DIM), 0.001)
        p[name + '_b'] = jnp.zeros((NUM_CLASSES,), jnp.float32)
    for i, name in enumerate(['emd_dlt0', 'emd_dlt1', 'ref_dlt0', 'ref_dlt1']):
        p[name + '_w'] = nrm(ks[9 + i], (NUM_CLASSES * 4, FC_DIM), 0.001)
        p[name + '_b'] = jnp.zeros((NUM_CLASSES * 4,), jnp.float32)
    return p


# ============================================================================
# Network wrapper (inference path)
# ============================================================================
class NetworkPallas:
    def __init__(self, params):
        assert NUM_CLASSES == 2, 'Only support two class (1fg/1bg).'
        self.w = prep_params(params)

    def __call__(self, image, im_info, pooled_features, rcnn_rois):
        # Network.forward preprocessing (visible in the reference source).
        img = image_normalize_pad(image, 64)
        del img, im_info
        # TODO(synk): ResNet50 / FPN / BFP backbone, RPN proposal generation
        # and the ROIAlignV2 roi_pooler are external modules with no provided
        # source; `pooled_features` and `rcnn_rois` stand in for their outputs.
        return rcnn_forward(pooled_features, rcnn_rois, self.w)


# ============================================================================
# Pure-JAX reference (mirrors the PyTorch code path) for verification
# ============================================================================
def reference_forward(p, pooled_nchw, rcnn_rois):
    prec = lax.Precision.HIGHEST

    def conv(x, w, b):
        y = lax.conv_general_dilated(
            x, w, (1, 1), ((1, 1), (1, 1)),
            dimension_numbers=('NCHW', 'OIHW', 'NCHW'), precision=prec)
        return y + b[None, :, None, None]

    def lin(x, w, b):
        return jnp.dot(x, w.T, precision=prec) + b

    pf = (conv(pooled_nchw, p['convA_w'], p['convA_b'])
          + conv(pooled_nchw, p['convB_w'], p['convB_b'])) / 2.0
    flat = pf.reshape(pf.shape[0], -1)
    h = jax.nn.relu(lin(flat, p['fc1_w'], p['fc1_b']))
    h = jax.nn.relu(lin(h, p['fc2_w'], p['fc2_b']))

    cls0 = lin(h, p['emd_cls0_w'], p['emd_cls0_b'])
    dlt0 = lin(h, p['emd_dlt0_w'], p['emd_dlt0_b'])
    cls1 = lin(h, p['emd_cls1_w'], p['emd_cls1_b'])
    dlt1 = lin(h, p['emd_dlt1_w'], p['emd_dlt1_b'])
    sc0 = jax.nn.softmax(cls0, axis=-1)
    sc1 = jax.nn.softmax(cls1, axis=-1)

    bf0 = jnp.tile(jnp.concatenate([dlt0[:, 4:], sc0[:, 1:2]], axis=1), (1, 4))
    bf1 = jnp.tile(jnp.concatenate([dlt1[:, 4:], sc1[:, 1:2]], axis=1), (1, 4))
    bf0 = jnp.concatenate([h, bf0], axis=1)
    bf1 = jnp.concatenate([h, bf1], axis=1)
    r0 = jax.nn.relu(lin(bf0, p['fc3_w'], p['fc3_b']))
    r1 = jax.nn.relu(lin(bf1, p['fc3_w'], p['fc3_b']))

    rc0 = lin(r0, p['ref_cls0_w'], p['ref_cls0_b'])
    rd0 = lin(r0, p['ref_dlt0_w'], p['ref_dlt0_b'])
    rc1 = lin(r1, p['ref_cls1_w'], p['ref_cls1_b'])
    rd1 = lin(r1, p['ref_dlt1_w'], p['ref_dlt1_b'])

    class_num = rc0.shape[-1] - 1
    tag = jnp.ones((rc0.shape[0] * class_num, 1), jnp.float32)
    s0 = jax.nn.softmax(rc0, -1)[:, 1:].reshape(-1, 1)
    s1 = jax.nn.softmax(rc1, -1)[:, 1:].reshape(-1, 1)
    d0 = rd0[:, 4:].reshape(-1, 4)
    d1 = rd1[:, 4:].reshape(-1, 4)
    base = jnp.tile(rcnn_rois[:, 1:5], (1, class_num)).reshape(-1, 4)

    def restore(rois, deltas):
        deltas = deltas * jnp.asarray(BBOX_STDS)[None] + jnp.asarray(BBOX_MEANS)[None]
        bw = rois[:, 2] - rois[:, 0] + 1.0
        bh = rois[:, 3] - rois[:, 1] + 1.0
        cx = rois[:, 0] + 0.5 * bw
        cy = rois[:, 1] + 0.5 * bh
        pcx = cx + deltas[:, 0] * bw
        pcy = cy + deltas[:, 1] * bh
        pw = bw * jnp.exp(deltas[:, 2])
        ph = bh * jnp.exp(deltas[:, 3])
        return jnp.stack(
            [pcx - 0.5 * pw, pcy - 0.5 * ph, pcx + 0.5 * pw, pcy + 0.5 * ph], axis=1)

    pb0 = jnp.concatenate([restore(base, d0), s0, tag], axis=1)
    pb1 = jnp.concatenate([restore(base, d1), s1, tag], axis=1)
    return jnp.concatenate([pb0, pb1], axis=1)


# ============================================================================
if __name__ == "__main__":
    key = jax.random.PRNGKey(0)
    kp, ki, kf, kr1, kr2 = jax.random.split(key, 5)

    params = init_params(kp)

    image = jax.random.uniform(ki, (2, 3, 16, 16), jnp.float32, 0.0, 255.0)
    im_info = jnp.array([[16., 16., 1., 16., 16., 0.],
                         [16., 16., 1., 16., 16., 0.]], jnp.float32)
    pooled = jax.random.normal(kf, (N_ROIS, CH, POOL, POOL), jnp.float32)
    xy = jax.random.uniform(kr1, (N_ROIS, 2), jnp.float32, 0.0, 30.0)
    wh = jax.random.uniform(kr2, (N_ROIS, 2), jnp.float32, 4.0, 40.0)
    rcnn_rois = jnp.concatenate(
        [jnp.zeros((N_ROIS, 1), jnp.float32), xy, xy + wh], axis=1)

    net = NetworkPallas(params)
    pred_bbox = net(image, im_info, pooled, rcnn_rois)
    pred_bbox = jax.block_until_ready(pred_bbox)

    ref = reference_forward(params, pooled, rcnn_rois)
    np.testing.assert_allclose(np.asarray(pred_bbox), np.asarray(ref),
                               rtol=5e-3, atol=5e-3)
    assert pred_bbox.shape == (N_ROIS, 12)
    print("KERNEL_OK")
</pallas_src>

<mosaic_0001>
module attributes {stable_mosaic.version = 11 : i64} {
  func.func @_img_norm_pad_kernel(%arg0: i32, %arg1: memref<1x3x16x16xf32, #tpu.memory_space<vmem>>, %arg2: memref<1x3x64x64xf32, #tpu.memory_space<vmem>>) attributes {dimension_semantics = [#tpu.dimension_semantics<parallel>], iteration_bounds = array<i64: 2>, scalar_prefetch = 0 : i64, scratch_operands = 0 : i64, tpu.core_type = #tpu.core_type<tc>, window_params = [{transform_indices = @transform_0, window_bounds = array<i64: 1, 3, 16, 16>}, {transform_indices = @transform_1, window_bounds = array<i64: 1, 3, 64, 64>}]} {
    %cst = arith.constant 0.000000e+00 : f32
    %0 = vector.broadcast %cst : f32 to vector<1x3x64x64xf32>
    %c0 = arith.constant 0 : index
    %c0_0 = arith.constant 0 : index
    %c0_1 = arith.constant 0 : index
    %c0_2 = arith.constant 0 : index
    %1 = vector.load %arg2[%c0, %c0_0, %c0_1, %c0_2] : memref<1x3x64x64xf32, #tpu.memory_space<vmem>>, vector<1x3x64x64xf32>
    tpu.vector_store %arg2[%c0, %c0_0, %c0_1, %c0_2], %0 {strides = array<i32>} : memref<1x3x64x64xf32, #tpu.memory_space<vmem>>, vector<1x3x64x64xf32>,
    %c0_3 = arith.constant 0 : index
    %c0_4 = arith.constant 0 : index
    %c0_5 = arith.constant 0 : index
    %c0_6 = arith.constant 0 : index
    %2 = vector.load %arg1[%c0_3, %c0_4, %c0_5, %c0_6] : memref<1x3x16x16xf32, #tpu.memory_space<vmem>>, vector<1x1x16x16xf32>
    %cst_7 = arith.constant 1.035300e+02 : f32
    %3 = vector.broadcast %cst_7 : f32 to vector<1x1x16x16xf32>
    %4 = arith.subf %2, %3 : vector<1x1x16x16xf32>
    %cst_8 = arith.constant 0.0174291935 : f32
    %5 = vector.broadcast %cst_8 : f32 to vector<1x1x16x16xf32>
    %6 = arith.mulf %4, %5 : vector<1x1x16x16xf32>
    %c0_9 = arith.constant 0 : index
    %c0_10 = arith.constant 0 : index
    %c0_11 = arith.constant 0 : index
    %c0_12 = arith.constant 0 : index
    %7 = vector.load %arg2[%c0_9, %c0_10, %c0_11, %c0_12] : memref<1x3x64x64xf32, #tpu.memory_space<vmem>>, vector<1x1x16x16xf32>
    tpu.vector_store %arg2[%c0_9, %c0_10, %c0_11, %c0_12], %6 {strides = array<i32>} : memref<1x3x64x64xf32, #tpu.memory_space<vmem>>, vector<1x1x16x16xf32>,
    %c0_13 = arith.constant 0 : index
    %c1 = arith.constant 1 : index
    %c0_14 = arith.constant 0 : index
    %c0_15 = arith.constant 0 : index
    %8 = vector.load %arg1[%c0_13, %c1, %c0_14, %c0_15] : memref<1x3x16x16xf32, #tpu.memory_space<vmem>>, vector<1x1x16x16xf32>
    %cst_16 = arith.constant 1.162800e+02 : f32
    %9 = vector.broadcast %cst_16 : f32 to vector<1x1x16x16xf32>
    %10 = arith.subf %8, %9 : vector<1x1x16x16xf32>
    %cst_17 = arith.constant 0.0175070036 : f32
    %11 = vector.broadcast %cst_17 : f32 to vector<1x1x16x16xf32>
    %12 = arith.mulf %10, %11 : vector<1x1x16x16xf32>
    %c0_18 = arith.constant 0 : index
    %c1_19 = arith.constant 1 : index
    %c0_20 = arith.constant 0 : index
    %c0_21 = arith.constant 0 : index
    %13 = vector.load %arg2[%c0_18, %c1_19, %c0_20, %c0_21] : memref<1x3x64x64xf32, #tpu.memory_space<vmem>>, vector<1x1x16x16xf32>
    tpu.vector_store %arg2[%c0_18, %c1_19, %c0_20, %c0_21], %12 {strides = array<i32>} : memref<1x3x64x64xf32, #tpu.memory_space<vmem>>, vector<1x1x16x16xf32>,
    %c0_22 = arith.constant 0 : index
    %c2 = arith.constant 2 : index
    %c0_23 = arith.constant 0 : index
    %c0_24 = arith.constant 0 : index
    %14 = vector.load %arg1[%c0_22, %c2, %c0_23, %c0_24] : memref<1x3x16x16xf32, #tpu.memory_space<vmem>>, vector<1x1x16x16xf32>
    %cst_25 = arith.constant 1.236750e+02 : f32
    %15 = vector.broadcast %cst_25 : f32 to vector<1x1x16x16xf32>
    %16 = arith.subf %14, %15 : vector<1x1x16x16xf32>
    %cst_26 = arith.constant 0.0171247534 : f32
    %17 = vector.broadcast %cst_26 : f32 to vector<1x1x16x16xf32>
    %18 = arith.mulf %16, %17 : vector<1x1x16x16xf32>
    %c0_27 = arith.constant 0 : index
    %c2_28 = arith.constant 2 : index
    %c0_29 = arith.constant 0 : index
    %c0_30 = arith.constant 0 : index
    %19 = vector.load %arg2[%c0_27, %c2_28, %c0_29, %c0_30] : memref<1x3x64x64xf32, #tpu.memory_space<vmem>>, vector<1x1x16x16xf32>
    tpu.vector_store %arg2[%c0_27, %c2_28, %c0_29, %c0_30], %18 {strides = array<i32>} : memref<1x3x64x64xf32, #tpu.memory_space<vmem>>, vector<1x1x16x16xf32>,
    return
  }
  func.func @transform_0(%arg0: i32) -> (i32, i32, i32, i32) {
    %c0_i32 = arith.constant 0 : i32
    %c0_i32_0 = arith.constant 0 : i32
    %c0_i32_1 = arith.constant 0 : i32
    %c0_i32_2 = arith.constant 0 : i32
    return %arg0, %c0_i32, %c0_i32_0, %c0_i32_1 : i32, i32, i32, i32
  }
  func.func @transform_1(%arg0: i32) -> (i32, i32, i32, i32) {
    %c0_i32 = arith.constant 0 : i32
    %c0_i32_0 = arith.constant 0 : i32
    %c0_i32_1 = arith.constant 0 : i32
    %c0_i32_2 = arith.constant 0 : i32
    return %arg0, %c0_i32, %c0_i32_0, %c0_i32_1 : i32, i32, i32, i32
  }
}

</mosaic_0001>

<bundles_post_ra>
// kernel: tpu_custom_call.1
= control target key start
LH: loop header
LB: loop body
LE: loop exit
PB: predicated region body
PF: predicated region fallthrough
CT: control target
= control target key end

     0   :  { %6 = vsyncpa [#allocation3], 0  ;;  %s685_s0 = inlined_call_operand.hbm [shape: f32[2,3,16,16], index: 0, kind: input, shape index: {}]   ;;  %s686_s1 = inlined_call_operand.hbm [shape: f32[2,3,64,64], index: 1, kind: output, shape index: {}]  }
   0x1   :  { %8 = vsyncpa [#allocation3 + $0x1], 0 }
   0x2   :  { %9 = vsyncpa [#allocation4], 0 }
   0x3   :  { %11 = vsyncpa [#allocation4 + $0x1], 0  ;;  %s465_s6 = smov 0   ;;  %s467_s7 = smov 0  }
   0x4   :  { %s469_s8 = smov 0   ;;  %s471_s9 = smov 0  }
   0x5 LB: > { %s486_s10 = sadd.s32 4294967295, %s446_s9   ;;  %s276_s11 = sadd.s32 4294967294, %s446_s9   ;;  %s446_s9 = sphi %s471_s9, %s700_s9   ;;  %s442_s8 = sphi %s469_s8, %s699_s8   ;;  %s438_s7 = sphi %s467_s7, %s698_s7   ;;  %s434_s6 = sphi %s465_s6, %s697_s6  }
   0x6   : > { %s490_s12 = sadd.s32 1, %s446_s9   ;;  %s24_s13 = sadd.s32 1, %s442_s8 }
   0x7   : > { %s21_s14 = ssub.s32 %s446_s9, %s490_s12  ;;  %p31_p0 = scmp.ne.s32.totalorder %s442_s8, %s438_s7 }
   0x8   : > { %p22_p1 = scmp.eq.s32.totalorder %s21_s14, 0  ;;  %p32_p2 = scmp.eq.s32.totalorder %s446_s9, 0 }
   0x9   : > { %p37_p3 = scmp.ne.s32.totalorder %s438_s7, %s434_s6  ;;  %p38_p4 = scmp.eq.s32.totalorder %s486_s10, 0 }
   0xa   : > { %s502_s15 = scalar_select %p22_p1, %s442_s8, %s24_s13  }
   0xb   : > { %p33_p5 = por %p32_p2, %p31_p0  ;;  %p504_p6 = por %p38_p4, %p37_p3 }
   0xc   : > { %p61_p7 = scmp.eq.s32.totalorder %s486_s10, 1  ;;  %p67_p8 = scmp.eq.s32.totalorder %s276_s11, 1 }
   0xd   : > { %s689_s16 = scalar_select %p504_p6, 1, 0 }
   0xe   : > { %p315_p10 = scmp.lt.s32.totalorder %s446_s9, 2  ;;  %p511_p11 = por %p61_p7, %p31_p0 }
   0xf   : > { %p515_p12 = por %p67_p8, %p37_p3  ;;  %s87_s19 = sand.u32 1, %s442_s8  }
  0x10   : > { %s690_s17 = scalar_select %p511_p11, 1, 0 }
  0x11   : > { %s691_s18 = scalar_select %p515_p12, 1, 0 }
  0x12   : > { %s299_s20 = smul.u32 768, %s446_s9  ;;  %p526_p13 = pnand %p315_p10, %p33_p5 }
  0x13   : > { %s298_s21 = smul.u32 48, %s87_s19  ;;  %s532_s28 = scalar_lea.sflag [#allocation3], %s87_s19 }
  0x14   : > { %s524_s24 = scalar_lea.hbm %s685_s0, %s299_s20  ;;  %p356_p1 = pneg %p526_p13 }
  0x15   : > { %s91_s26 = scalar_lea.vmem [#allocation2], %s298_s21  ;;  %s354_s29 = scalar_lea.hbm %s524_s24, 768 }
  0x16   : > { %s98_s27 = sshll.u32 %s91_s26, 4  ;;  %p355_p0 = scmp.ne.s32.totalorder %s524_s24, %s354_s29  ;;  %s530_s27 = int_to_ptr.vmem [resolvable:$true] %s98_s27 }
  0x17   : > { %s359_s3 = scalar_lea.hbm %s685_s0, 1536  ;;  %p360_p4 = scmp.lt.s32.totalorder %s524_s24, %s685_s0 }
  0x18   : > { %p357_p2 = pnand %p356_p1, %p355_p0  ;;  %p361_p5 = scmp.lt.s32.totalorder %s359_s3, %s354_s29 }
  0x1a   : > { %p358_p3 = pneg %p357_p2  ;;  %p362_p7 = por %p361_p5, %p360_p4 }
  0x1c   : > { %p363_p8 = pnand %p362_p7, %p358_p3 }
  0x1e   : > { %366 = shalt.err (!%p363_p8)
}
  0x1f   : > { %s367_s11 = scalar_lea.vmem %s530_s27, 768  ;;  %s448_s13 = smov [#allocation2]  }
  0x20   : > { %p368_p10 = scmp.ne.s32.totalorder %s530_s27, %s367_s11  ;;  %s372_s14 = sshll.u32 %s448_s13, 4  ;;  %s373_s14 = int_to_ptr.vmem [resolvable:$false] %s372_s14 }
  0x21   : > { %s374_s19 = scalar_lea.vmem %s373_s14, 1536  ;;  %p375_p2 = scmp.lt.s32.totalorder %s530_s27, %s373_s14 }
  0x22   : > { %p370_p9 = pnand %p368_p10, %p356_p1  ;;  %p376_p12 = scmp.lt.s32.totalorder %s374_s19, %s367_s11 }
  0x24   : > { %p371_p0 = pneg %p370_p9  ;;  %p377_p11 = por %p376_p12, %p375_p2 }
  0x26   : > { %p378_p6 = pnand %p377_p11, %p371_p0 }
  0x28   : > { %381 = shalt.err (!%p378_p6)
}
  0x29   : > { %s449_s20 = smov 128   ;;  %s450_s21 = smov 8  }
  0x2a   : > { %310 = dma.hbm_to_vmem [thread:$0]  (!%p526_p13), %s524_s24, 768, %s530_s27, %s532_s28, %s449_s20, %s449_s20, %s450_s21  }
  0x2b   : > { %p280_p9 = scmp.ge.s32.totalorder %s446_s9, 1  ;;  %p106_p1 = scmp.lt.s32.totalorder %s446_s9, 3 }
  0x2d   : > { %p107_p3 = pnand %p280_p9, %p106_p1 }
  0x2e   : > { %s556_s22 = sand.u32 (!%p107_p3), 1, %s438_s7   ;;  %p693_p6 = scmp.ne.s32.totalorder (!%p107_p3), %s689_s16, 0 }
  0x2f   : > { %110 = sbr.rel (%p107_p3) target bundleno = 84 (0x54), region = 24  ;;  %s113_s26 = scalar_lea.sflag (!%p107_p3), [#allocation3], %s556_s22 }
  0x30   : > { %s300_s23 = smul.u32 (!%p107_p3), 48, %s556_s22 }
  0x32   : > { %s560_s29 = scalar_lea.vmem (!%p107_p3), [#allocation2], %s300_s23 }
  0x34   : > { %425 = dma.done.wait (%p693_p6), %s113_s26, 768  }
  0x35   : > { %427 = vsyncadd (%p693_p6), %s113_s26, 4294966528  ;;  %s301_s24 = smul.u32 192, %s556_s22  ;;  %vm135_vm0 = vcmask 523264   ;;  %v451_v0 = vmov 0.0   ;;  %v160_v1 = vld [vmem:[%s560_s29] sm:$0xff]  ;;  %v161_v2 = vld [vmem:[%s560_s29 + $0x8] sm:$0xff] }
  0x36   : > { %v283_v3 = vld [vmem:[%s560_s29 + $0x10] sm:$0xff]  ;;  %v281_v4 = vadd.f32 -103.53, %v160_v1  ;;  %v282_v5 = vadd.f32 -103.53, %v161_v2  ;;  %vm166_vm1 = vcmask 130048  }
  0x37   : > { %s567_s25 = scalar_lea.vmem [#allocation5], %s301_s24  ;;  %v285_v6 = vadd.f32 -116.28, %v283_v3  ;;  %v284_v7 = vld [vmem:[%s560_s29 + $0x18] sm:$0xff]  ;;  %v289_v8 = vld [vmem:[%s560_s29 + $0x20] sm:$0xff]  ;;  %v290_v9 = vld [vmem:[%s560_s29 + $0x28] sm:$0xff] }
  0x38   : > { %136 = vst.msk [vmem:[%s567_s25] sm:$0xff] %vm135_vm0, %v451_v0  ;;  %137 = vst.msk [vmem:[%s567_s25 + $0x8] sm:$0xff] %vm135_vm0, %v451_v0  ;;  %s302_s16 = smul.u32 3072, %s486_s10  ;;  %s203_s27 = sshll.u32 %s567_s25, 4  ;;  %v164_v10 = vmul.f32 0.017429193, %v281_v4  ;;  %s636_s27 = int_to_ptr.vmem [resolvable:$true] %s203_s27 }
  0x39   : > { %138 = vst.msk [vmem:[%s567_s25 + $0x10] sm:$0xff] %vm135_vm0, %v451_v0  ;;  %139 = vst.msk [vmem:[%s567_s25 + $0x18] sm:$0xff] %vm135_vm0, %v451_v0  ;;  %v165_v11 = vmul.f32 0.017429193, %v282_v5  ;;  %v174_v12 = vmul.f32 0.017507004, %v285_v6 }
  0x3a   : > { %140 = vst.msk [vmem:[%s567_s25 + $0x20] sm:$0xff] %vm135_vm0, %v451_v0  ;;  %141 = vst.msk [vmem:[%s567_s25 + $0x28] sm:$0xff] %vm135_vm0, %v451_v0  ;;  %v286_v13 = vadd.f32 -116.28, %v284_v7  ;;  %v291_v14 = vadd.f32 -123.675, %v289_v8  ;;  %s634_s30 = scalar_lea.hbm %s686_s1, %s302_s16 }
  0x3b   : > { %142 = vst.msk [vmem:[%s567_s25 + $0x30] sm:$0xff] %vm135_vm0, %v451_v0  ;;  %143 = vst.msk [vmem:[%s567_s25 + $0x38] sm:$0xff] %vm135_vm0, %v451_v0  ;;  %v292_v15 = vadd.f32 -123.675, %v290_v9  ;;  %s190_s2 = scalar_lea.sflag [#allocation4], %s556_s22  ;;  %s382_s3 = scalar_lea.vmem %s636_s27, 3072 }
  0x3c   : > { %144 = vst.msk [vmem:[%s567_s25 + $0x40] sm:$0xff] %vm135_vm0, %v451_v0  ;;  %145 = vst.msk [vmem:[%s567_s25 + $0x48] sm:$0xff] %vm135_vm0, %v451_v0  ;;  %v175_v16 = vmul.f32 0.017507004, %v286_v13  ;;  %v184_v17 = vmul.f32 0.017124753, %v291_v14  ;;  %p383_p11 = scmp.ne.s32.totalorder %s636_s27, %s382_s3 }
  0x3d   : > { %146 = vst.msk [vmem:[%s567_s25 + $0x50] sm:$0xff] %vm135_vm0, %v451_v0  ;;  %147 = vst.msk [vmem:[%s567_s25 + $0x58] sm:$0xff] %vm135_vm0, %v451_v0  ;;  %v185_v18 = vmul.f32 0.017124753, %v292_v15  ;;  %p694_p12 = scmp.ne.s32.totalorder %s690_s17, 0  ;;  %s452_s4 = smov [#allocation5]  }
  0x3e   : > { %148 = vst.msk [vmem:[%s567_s25 + $0x60] sm:$0xff] %vm135_vm0, %v451_v0  ;;  %149 = vst.msk [vmem:[%s567_s25 + $0x68] sm:$0xff] %vm135_vm0, %v451_v0  ;;  %s386_s5 = sshll.u32 %s452_s4, 4  ;;  %s387_s5 = int_to_ptr.vmem [resolvable:$false] %s386_s5 }
  0x3f   : > { %150 = vst.msk [vmem:[%s567_s25 + $0x70] sm:$0xff] %vm135_vm0, %v451_v0  ;;  %151 = vst.msk [vmem:[%s567_s25 + $0x78] sm:$0xff] %vm135_vm0, %v451_v0  ;;  %p384_p13 = pnand %p383_p11, %p694_p12  ;;  %s388_s11 = scalar_lea.vmem %s387_s5, 6144 }
  0x40   : > { %152 = vst.msk [vmem:[%s567_s25 + $0x80] sm:$0xff] %vm135_vm0, %v451_v0  ;;  %153 = vst.msk [vmem:[%s567_s25 + $0x88] sm:$0xff] %vm135_vm0, %v451_v0  ;;  %p389_p5 = scmp.lt.s32.totalorder %s636_s27, %s387_s5  ;;  %p390_p7 = scmp.lt.s32.totalorder %s388_s11, %s382_s3 }
  0x41   : > { %154 = vst.msk [vmem:[%s567_s25 + $0x90] sm:$0xff] %vm135_vm0, %v451_v0  ;;  %155 = vst.msk [vmem:[%s567_s25 + $0x98] sm:$0xff] %vm135_vm0, %v451_v0  ;;  %p385_p4 = pneg %p384_p13 }
  0x42   : > { %156 = vst.msk [vmem:[%s567_s25 + $0xa0] sm:$0xff] %vm135_vm0, %v451_v0  ;;  %157 = vst.msk [vmem:[%s567_s25 + $0xa8] sm:$0xff] %vm135_vm0, %v451_v0  ;;  %p391_p8 = por %p390_p7, %p389_p5 }
  0x43   : > { %158 = vst.msk [vmem:[%s567_s25 + $0xb0] sm:$0xff] %vm135_vm0, %v451_v0  ;;  %159 = vst.msk [vmem:[%s567_s25 + $0xb8] sm:$0xff] %vm135_vm0, %v451_v0 }
  0x44   : > { %167 = vst.msk [vmem:[%s567_s25] sm:$0xff] %vm166_vm1, %v164_v10  ;;  %168 = vst.msk [vmem:[%s567_s25 + $0x8] sm:$0xff] %vm166_vm1, %v165_v11  ;;  %p392_p10 = pnand %p391_p8, %p385_p4 }
  0x45   : > { %287 = vst.msk [vmem:[%s567_s25 + $0x40] sm:$0xff] %vm166_vm1, %v174_v12  ;;  %288 = vst.msk [vmem:[%s567_s25 + $0x48] sm:$0xff] %vm166_vm1, %v175_v16 }
  0x46   : > { %293 = vst.msk [vmem:[%s567_s25 + $0x80] sm:$0xff] %vm166_vm1, %v184_v17  ;;  %294 = vst.msk [vmem:[%s567_s25 + $0x88] sm:$0xff] %vm166_vm1, %v185_v18 }
  0x47   : > { %395 = shalt.err (!%p392_p10)
}
  0x48   : > { %s396_s13 = scalar_lea.hbm %s634_s30, 3072  ;;  %s400_s20 = scalar_lea.hbm %s686_s1, 6144 }
  0x49   : > { %p397_p0 = scmp.ne.s32.totalorder %s634_s30, %s396_s13  ;;  %p401_p1 = scmp.lt.s32.totalorder %s634_s30, %s686_s1 }
  0x4a   : > { %p402_p3 = scmp.lt.s32.totalorder %s400_s20, %s396_s13 }
  0x4b   : > { %p398_p2 = pnand %p397_p0, %p694_p12 }
  0x4c   : > { %p403_p6 = por %p402_p3, %p401_p1 }
  0x4d   : > { %p399_p9 = pneg %p398_p2 }
  0x4f   : > { %p404_p11 = pnand %p403_p6, %p399_p9 }
  0x51   : > { %407 = shalt.err (!%p404_p11)
}
  0x52   : > { %s453_s26 = smov 128   ;;  %s454_s29 = smov 8  }
  0x53   : > { %305 = dma.vmem_to_hbm [thread:$0]  (%p694_p12), %s636_s27, 3072, %s634_s30, %s190_s2, %s453_s26, %s453_s26, %s454_s29  }
  0x54 PF: > { %s218_s24 = sand.u32 1, %s434_s6   ;;  %p695_p13 = scmp.ne.s32.totalorder %s691_s18, 0 }
  0x55   : > { %p696_p4 = scmp.ge.s32.totalorder %s446_s9, 2  ;;  %s219_s25 = scalar_lea.sflag [#allocation4], %s218_s24 }
  0x57   : > { %p312_p5 = pnand %p696_p4, %p695_p13 }
  0x59   : > { %p313_p7 = pneg %p312_p5 }
  0x5b   : > { %429 = dma.done.wait (%p313_p7), %s219_s25, 3072  }
  0x5c   : > { %431 = vsyncadd (%p313_p7), %s219_s25, 4294964224  ;;  %p14_p8 = scmp.ge.s32.totalorder %s490_s12, 4   ;;  %s697_s6 = smov %s438_s7 }
  0x5d   : > { %s698_s7 = smov %s442_s8  ;;  %s699_s8 = smov %s502_s15 }
  0x5e   : > { %s700_s9 = smov %s490_s12  ;;  %16 = sbr.rel (!%p14_p8) target bundleno = 5 (0x5), region = 73 }
  0x63   :  { %224 = vsyncpa [#allocation3], 1 }
  0x64   :  { %226 = vsyncpa [#allocation3 + $0x1], 1 }
  0x65   :  { %227 = vsyncpa [#allocation4], 1 }
  0x66   :  { %229 = vsyncpa [#allocation4 + $0x1], 1 }

</bundles_post_ra>
